<compile_context>
chip_gen: v6e
topology: v6e:2x2x1
jax: 0.10.0
libtpu: 0.0.40
codegen_flags: <defaults>
</compile_context>

<pallas_src>
import functools

import jax
import jax.numpy as jnp
from jax import lax
from jax.experimental import pallas as pl
from jax.experimental.pallas import tpu as pltpu


def _round_up(x, m):
    return ((x + m - 1) // m) * m


def _cdiv(a, b):
    return (a + b - 1) // b


try:
    _IS_V5 = "v5" in jax.devices()[0].device_kind.lower()
except Exception:
    _IS_V5 = False


def _choose_tiles(M, Np):
    """Pick (TM, TN) output tiles.

    TN=256 on v6e/v7x when the padded channel dim allows (fewer grid steps),
    TN=128 on v5e (128x128 MXU, avoids f32-accumulator vreg pressure).
    Force >= 2 output blocks whenever possible so v7x's two TensorCores both
    get work through the "parallel" grid axes.
    """
    TN = 256 if (Np % 256 == 0 and not _IS_V5) else 128
    TM = 128 if M >= 128 else _round_up(M, 8)
    if _cdiv(M, TM) * (Np // TN) < 2:
        if Np >= 256:
            TN = 128
        elif M >= 16:
            TM = _round_up(_cdiv(M, 2), 8)
    return TM, TN


def _pad_ch(x, c):
    pad = c - x.shape[-1]
    if pad == 0:
        return x
    return jnp.pad(x, ((0, 0),) * (x.ndim - 1) + ((0, pad),))


# ---------------------------------------------------------------------------
# Pallas kernels
# ---------------------------------------------------------------------------

def _matmul_bias_act_kernel(a_ref, b_ref, c_ref, o_ref, *, relu):
    # bf16 (TM,Kp) @ bf16 (Kp,TN) -> f32 acc; BN is pre-folded into b, so only
    # bias add (+ReLU) remains in the epilogue.
    acc = jnp.dot(a_ref[...], b_ref[...], preferred_element_type=jnp.float32)
    acc = acc + c_ref[...]
    if relu:
        acc = jnp.maximum(acc, 0.0)
    o_ref[...] = acc.astype(o_ref.dtype)


def _conv3x3_s1_kernel(x_ref, w_ref, b_ref, o_ref, *, taps, tm, relu):
    # Fused-im2col stride-1 3x3 conv.  x_ref holds the whole flat, spatially
    # padded input (Mx, Cp) in VMEM; each of the 9 taps is a row-shifted slice
    # contracted against its (Cp, TN) weight slab, accumulated in f32 registers.
    m0 = pl.multiple_of(pl.program_id(0) * tm, 8)
    acc = None
    for k, d in enumerate(taps):
        a = x_ref[pl.ds(m0 + d, tm), :]
        c = jnp.dot(a, w_ref[k], preferred_element_type=jnp.float32)
        acc = c if acc is None else acc + c
    acc = acc + b_ref[...]
    if relu:
        acc = jnp.maximum(acc, 0.0)
    o_ref[...] = acc.astype(o_ref.dtype)


def _conv3_block_kernel(a1, a2, a3, a4, w1, w2, w3, w4, b_ref, r_ref, o_ref):
    # Block-ending 1x1 conv: 4 branch inputs accumulated over K (replaces the
    # lane-misaligned channel concat), fused bias + residual add + ReLU.
    acc = jnp.dot(a1[...], w1[...], preferred_element_type=jnp.float32)
    acc += jnp.dot(a2[...], w2[...], preferred_element_type=jnp.float32)
    acc += jnp.dot(a3[...], w3[...], preferred_element_type=jnp.float32)
    acc += jnp.dot(a4[...], w4[...], preferred_element_type=jnp.float32)
    acc = acc + b_ref[...] + r_ref[...].astype(jnp.float32)
    o_ref[...] = jnp.maximum(acc, 0.0).astype(o_ref.dtype)


def _gap_fc_kernel(x_ref, w_ref, b_ref, o_ref, *, inv_hw):
    # Global average pool over H*W fused with the (2048 -> 4, padded to 128) fc.
    xm = jnp.sum(x_ref[...].astype(jnp.float32), axis=1) * inv_hw     # (N, C)
    o_ref[...] = jnp.dot(xm, w_ref[...], preferred_element_type=jnp.float32) + b_ref[...]


# ---------------------------------------------------------------------------
# Conv wrappers
# ---------------------------------------------------------------------------

def matmul_bias_act(A, w, *, relu, out_dtype=jnp.bfloat16):
    """out = act(A @ Bp + bias); Bp already has folded BN scale.  Output keeps
    the zero-padded channel dim (Np) so downstream consumers never re-pad."""
    M, K = A.shape
    Kp, Np = w["Kp"], w["Np"]
    TM, TN = _choose_tiles(M, Np)
    Mp = _round_up(M, TM)

    Ap = A.astype(jnp.bfloat16)
    if Mp != M or Kp != K:
        Ap = jnp.pad(Ap, ((0, Mp - M), (0, Kp - K)))

    out = pl.pallas_call(
        functools.partial(_matmul_bias_act_kernel, relu=relu),
        out_shape=jax.ShapeDtypeStruct((Mp, Np), out_dtype),
        grid=(Mp // TM, Np // TN),
        in_specs=[
            pl.BlockSpec((TM, Kp), lambda i, j: (i, 0)),
            pl.BlockSpec((Kp, TN), lambda i, j: (0, j)),
            pl.BlockSpec((1, TN), lambda i, j: (0, j)),
        ],
        out_specs=pl.BlockSpec((TM, TN), lambda i, j: (i, j)),
        compiler_params=pltpu.CompilerParams(
            dimension_semantics=("parallel", "parallel")),
    )(Ap, w["Bp"], w["bias"])

    if Mp != M:
        out = out[:M]
    return out  # (M, Np), channels >= cout are exactly zero


def conv1x1(x, w, *, relu):
    N, H, W, C = x.shape
    A = x.astype(jnp.bfloat16).reshape(N * H * W, C)
    out = matmul_bias_act(A, w, relu=relu)
    return out.reshape(N, H, W, w["Np"])


def conv3x3_s1_fused(x, w, *, relu=True):
    """Stride-1, pad-1 3x3 conv with the im2col fused into the kernel.

    The input is padded spatially by 1 (and channel-padded to Cp), flattened to
    (N*(H+2)*(W+2), Cp); each tap (i,j) of the 3x3 stencil is then just a
    row-shift by i*(W+2)+j of that flat array, so the kernel accumulates 9 small
    matmuls over register-resident shifted slices.  Rows whose shifted read
    would leave the valid region correspond to spatial positions >= (H, W) and
    are sliced away afterwards.
    """
    N, H, W, C = x.shape
    Cp, Np = w["Cp"], w["Np"]
    Hp, Wp = H + 2, W + 2
    L = Hp * Wp
    M = N * L

    xp = jnp.pad(x.astype(jnp.bfloat16), ((0, 0), (1, 1), (1, 1), (0, Cp - C)))
    X = xp.reshape(M, Cp)

    TM, TN = _choose_tiles(M, Np)
    Mp = _round_up(M, TM)
    dmax = 2 * Wp + 2
    Mx = Mp + _round_up(dmax, 8)
    X = jnp.pad(X, ((0, Mx - M), (0, 0)))
    taps = tuple(i * Wp + j for i in range(3) for j in range(3))

    out = pl.pallas_call(
        functools.partial(_conv3x3_s1_kernel, taps=taps, tm=TM, relu=relu),
        out_shape=jax.ShapeDtypeStruct((Mp, Np), jnp.bfloat16),
        grid=(Mp // TM, Np // TN),
        in_specs=[
            pl.BlockSpec((Mx, Cp), lambda i, j: (0, 0)),
            pl.BlockSpec((9, Cp, TN), lambda i, j: (0, 0, j)),
            pl.BlockSpec((1, TN), lambda i, j: (0, j)),
        ],
        out_specs=pl.BlockSpec((TM, TN), lambda i, j: (i, j)),
        compiler_params=pltpu.CompilerParams(
            dimension_semantics=("parallel", "parallel")),
    )(X, w["Wt"], w["bias"])

    if Mp != M:
        out = out[:M]
    out = out.reshape(N, Hp, Wp, Np)[:, :H, :W, :]
    return out  # channels padded to Np (zeros beyond cout)


def _im2col(x, kh, kw, stride, padding):
    # Materialized im2col; only used for the few stride-2 3x3 convs.
    N, H, W, C = x.shape
    xp = jnp.pad(x, ((0, 0), (padding, padding), (padding, padding), (0, 0)))
    Hp, Wp = H + 2 * padding, W + 2 * padding
    Ho = (Hp - kh) // stride + 1
    Wo = (Wp - kw) // stride + 1
    cols = []
    for i in range(kh):
        for j in range(kw):
            patch = lax.slice(
                xp,
                (0, i, j, 0),
                (N, i + stride * (Ho - 1) + 1, j + stride * (Wo - 1) + 1, C),
                (1, stride, stride, 1))
            cols.append(patch)
    pat = jnp.concatenate(cols, axis=-1)          # (N, Ho, Wo, kh*kw*C)
    return pat.reshape(N * Ho * Wo, kh * kw * C), (N, Ho, Wo)


def conv3x3_im2col(x, w, *, stride, padding, relu):
    A, (N, Ho, Wo) = _im2col(x.astype(jnp.bfloat16), 3, 3, stride, padding)
    out = matmul_bias_act(A, w, relu=relu)
    return out.reshape(N, Ho, Wo, w["Np"])


def conv3_block_end(sps, w3, residual):
    """Block-ending 1x1 conv: 4 channel-padded branch inputs, fused residual+ReLU."""
    N, Ho, Wo, P = sps[0].shape
    M = N * Ho * Wo
    Np = w3["Np"]
    TM, TN = _choose_tiles(M, Np)
    Mp = _round_up(M, TM)

    A = []
    for s in sps:
        a = s.astype(jnp.bfloat16).reshape(M, P)
        if Mp != M:
            a = jnp.pad(a, ((0, Mp - M), (0, 0)))
        A.append(a)
    R = residual.astype(jnp.bfloat16).reshape(M, Np)
    if Mp != M:
        R = jnp.pad(R, ((0, Mp - M), (0, 0)))

    out = pl.pallas_call(
        _conv3_block_kernel,
        out_shape=jax.ShapeDtypeStruct((Mp, Np), jnp.bfloat16),
        grid=(Mp // TM, Np // TN),
        in_specs=(
            [pl.BlockSpec((TM, P), lambda i, j: (i, 0))] * 4 +
            [pl.BlockSpec((P, TN), lambda i, j: (0, j))] * 4 +
            [pl.BlockSpec((1, TN), lambda i, j: (0, j)),
             pl.BlockSpec((TM, TN), lambda i, j: (i, j))]),
        out_specs=pl.BlockSpec((TM, TN), lambda i, j: (i, j)),
        compiler_params=pltpu.CompilerParams(
            dimension_semantics=("parallel", "parallel")),
    )(*A, *w3["parts"], w3["bias"], R)

    if Mp != M:
        out = out[:M]
    return out.reshape(N, Ho, Wo, Np)   # Np == cout for all block outputs


def gap_fc(x, fc):
    # Fused global-average-pool + fc (single tiny kernel, f32 head).
    N, H, W, C = x.shape
    HW = H * W
    x3 = x.astype(jnp.float32).reshape(N, HW, C)
    Np = fc["Np"]
    out = pl.pallas_call(
        functools.partial(_gap_fc_kernel, inv_hw=1.0 / HW),
        out_shape=jax.ShapeDtypeStruct((N, Np), jnp.float32),
        grid=(1,),
        in_specs=[
            pl.BlockSpec((N, HW, C), lambda i: (0, 0, 0)),
            pl.BlockSpec((C, Np), lambda i: (0, 0)),
            pl.BlockSpec((1, Np), lambda i: (0, 0)),
        ],
        out_specs=pl.BlockSpec((N, Np), lambda i: (0, 0)),
    )(x3, fc["W"], fc["bias"])
    return out[:, :fc["cout"]]


# ---------------------------------------------------------------------------
# Pooling glue
# ---------------------------------------------------------------------------

# TODO(synk): pooling windows (maxpool / avgpool) kept as lax.reduce_window glue,
# not lowered to Pallas (and not yet fused into the following conv's A read).
def max_pool_3x3_s2(x):
    return lax.reduce_window(x, jnp.asarray(-jnp.inf, x.dtype), lax.max,
                             (1, 3, 3, 1), (1, 2, 2, 1),
                             padding=((0, 0), (1, 1), (1, 1), (0, 0)))


def avg_pool_3x3(x, stride):
    # nn.AvgPool2d(3, stride, padding=1), count_include_pad=True (divisor 9)
    s = lax.reduce_window(x.astype(jnp.float32), 0.0, lax.add,
                          (1, 3, 3, 1), (1, stride, stride, 1),
                          padding=((0, 0), (1, 1), (1, 1), (0, 0)))
    return (s * (1.0 / 9.0)).astype(x.dtype)


def avg_pool_2x2_s2(x):
    # nn.AvgPool2d(2, 2, ceil_mode=True, count_include_pad=False); inputs even-sized
    s = lax.reduce_window(x.astype(jnp.float32), 0.0, lax.add,
                          (1, 2, 2, 1), (1, 2, 2, 1), padding="VALID")
    return (s * 0.25).astype(x.dtype)


# ---------------------------------------------------------------------------
# Deterministic parameter init + hoisted weight prep (BN scale folded into weights)
# ---------------------------------------------------------------------------

class KeyGen:
    def __init__(self, seed):
        self.key = jax.random.PRNGKey(seed)

    def __call__(self):
        self.key, k = jax.random.split(self.key)
        return k


def init_conv(kg, kh, kw, cin, cout):
    fan_in = kh * kw * cin
    return jax.random.normal(kg(), (kh, kw, cin, cout), jnp.float32) * (2.0 / fan_in) ** 0.5


def init_bn(kg, c, eps=1e-5):
    # eval-mode BN folded: running_mean=0, running_var=1
    gamma = 1.0 + 0.05 * jax.random.normal(kg(), (c,), jnp.float32)
    beta = 0.05 * jax.random.normal(kg(), (c,), jnp.float32)
    scale = gamma / jnp.sqrt(1.0 + eps)
    bias = beta
    return scale, bias


def prep_matmul(w2d, scale, bias):
    """1x1 conv or reshaped (9*cin, cout) stride-2 3x3 conv; BN scale folded in."""
    K, cout = w2d.shape
    Kp = _round_up(K, 128)
    Np = _round_up(cout, 128)
    B = w2d.astype(jnp.float32) * scale[None, :]
    Bp = jnp.pad(B, ((0, Kp - K), (0, Np - cout))).astype(jnp.bfloat16)
    b = jnp.pad(bias.astype(jnp.float32).reshape(1, cout), ((0, 0), (0, Np - cout)))
    return {"Kp": Kp, "Np": Np, "cout": cout, "Bp": Bp, "bias": b}


def prep_conv3s1(w, scale, bias):
    """Stride-1 3x3 conv for the fused-im2col kernel: (9, Cp, Np) tap-stacked weight."""
    kh, kw, cin, cout = w.shape
    Cp = _round_up(cin, 128)
    Np = _round_up(cout, 128)
    wf = w.astype(jnp.float32) * scale[None, None, None, :]
    Wt = jnp.pad(wf, ((0, 0), (0, 0), (0, Cp - cin), (0, Np - cout)))
    Wt = Wt.reshape(kh * kw, Cp, Np).astype(jnp.bfloat16)
    b = jnp.pad(bias.astype(jnp.float32).reshape(1, cout), ((0, 0), (0, Np - cout)))
    return {"Cp": Cp, "Np": Np, "cin": cin, "cout": cout, "Wt": Wt, "bias": b}


def prep_conv3_parts(w2d, scale, bias, width):
    """Block-ending 1x1 conv split into 4 per-branch (P, Np) weight slabs."""
    ws, cout = w2d.shape
    P = _round_up(width, 128)
    Np = _round_up(cout, 128)
    wf = w2d.astype(jnp.float32) * scale[None, :]
    parts = []
    for i in range(4):
        blk = wf[i * width:(i + 1) * width]
        parts.append(jnp.pad(blk, ((0, P - width), (0, Np - cout))).astype(jnp.bfloat16))
    b = jnp.pad(bias.astype(jnp.float32).reshape(1, cout), ((0, 0), (0, Np - cout)))
    return {"P": P, "Np": Np, "cout": cout, "parts": parts, "bias": b}


def prep_fc(w, b):
    K, cout = w.shape
    Np = _round_up(cout, 128)
    Wp_ = jnp.pad(w.astype(jnp.float32), ((0, 0), (0, Np - cout)))
    bp = jnp.pad(b.astype(jnp.float32).reshape(1, cout), ((0, 0), (0, Np - cout)))
    return {"W": Wp_, "bias": bp, "cout": cout, "Np": Np}


def init_block(kg, inplanes, planes, stride, has_down):
    # Bottle2neck: base_width=26, scale=4, expansion=4
    width = (planes * 26) // 64
    ws = width * 4
    out_ch = planes * 4
    is_first = has_down or stride > 1
    if stride == 1:
        convs = [prep_conv3s1(init_conv(kg, 3, 3, width, width), *init_bn(kg, width))
                 for _ in range(3)]
    else:
        convs = [prep_matmul(init_conv(kg, 3, 3, width, width).reshape(9 * width, width),
                             *init_bn(kg, width)) for _ in range(3)]
    p = {
        "stride": stride,
        "width": width,
        "is_first": is_first,
        "P": _round_up(width, 128),
        "conv1": prep_matmul(init_conv(kg, 1, 1, inplanes, ws).reshape(inplanes, ws),
                             *init_bn(kg, ws)),
        "convs": convs,
        "conv3": prep_conv3_parts(init_conv(kg, 1, 1, ws, out_ch).reshape(ws, out_ch),
                                  *init_bn(kg, out_ch), width=width),
        "down": (prep_matmul(init_conv(kg, 1, 1, inplanes, out_ch).reshape(inplanes, out_ch),
                             *init_bn(kg, out_ch)) if has_down else None),
    }
    return p


def init_model(seed=0):
    kg = KeyGen(seed)
    params = {
        "stem": [
            prep_matmul(init_conv(kg, 3, 3, 3, 32).reshape(27, 32), *init_bn(kg, 32)),
            prep_conv3s1(init_conv(kg, 3, 3, 32, 32), *init_bn(kg, 32)),
            prep_conv3s1(init_conv(kg, 3, 3, 32, 64), *init_bn(kg, 64)),
        ],
    }
    stages = []
    inplanes = 64
    for stage_idx, (planes, nblocks) in enumerate(zip([64, 128, 256, 512], [3, 4, 6, 3])):
        blocks = []
        for b in range(nblocks):
            stride = 2 if (stage_idx > 0 and b == 0) else 1
            blocks.append(init_block(kg, inplanes, planes, stride, has_down=(b == 0)))
            inplanes = planes * 4
        stages.append(blocks)
    params["stages"] = stages
    fc_w = jax.random.normal(kg(), (2048, 4), jnp.float32) * (1.0 / 2048.0) ** 0.5
    params["fc"] = prep_fc(fc_w, jnp.zeros((4,), jnp.float32))
    return params


# ---------------------------------------------------------------------------
# Forward pass
# ---------------------------------------------------------------------------

def stem_forward(x, stem):
    # conv 3x3 s2 (im2col path) -> two fused stride-1 3x3 convs -> maxpool.
    # Channel padding is carried between layers (zero-padded weight rows absorb it).
    x = conv3x3_im2col(x, stem[0], stride=2, padding=1, relu=True)
    x = conv3x3_s1_fused(x, stem[1], relu=True)
    x = conv3x3_s1_fused(x, stem[2], relu=True)
    return max_pool_3x3_s2(x)


def block_forward(x, p):
    stride, width, is_first, P = p["stride"], p["width"], p["is_first"], p["P"]

    out1 = conv1x1(x, p["conv1"], relu=True)                 # (N,H,W,Np1), padded chans
    # TODO(synk): the per-branch channel slices below are still lane-misaligned XLA
    # copies (widths 26/52/104/208); folding them into the branch-conv A read is
    # left for a future revision.
    spx = [out1[..., i * width:(i + 1) * width] for i in range(4)]

    spo = []
    sp = None
    for i in range(3):
        if i == 0 or is_first:
            inp = spx[i]
        else:
            inp = _pad_ch(spx[i], P) + sp                    # running sum, channel-padded
        if stride == 1:
            sp = conv3x3_s1_fused(inp, p["convs"][i], relu=True)      # (N,Ho,Wo,P)
        else:
            sp = conv3x3_im2col(inp, p["convs"][i], stride=stride, padding=1, relu=True)
        spo.append(sp)
    sp4 = avg_pool_3x3(spx[3], stride) if is_first else spx[3]
    spo.append(_pad_ch(sp4, P))

    if p["down"] is not None:
        sc = avg_pool_2x2_s2(x) if stride > 1 else x
        shortcut = conv1x1(sc, p["down"], relu=False)        # Np == cout exactly
    else:
        shortcut = x

    # conv3 + bn3 + residual add + ReLU, 4 branch inputs K-accumulated in one kernel.
    return conv3_block_end(spo, p["conv3"], shortcut)


# TODO(synk): loss branch is tiny elementwise math over (B,4) boxes; kept in plain
# JAX rather than a dedicated Pallas kernel.
def smooth_l1_loss_mean(pred, target, beta=1.0):
    d = jnp.abs(pred - target)
    return jnp.mean(jnp.where(d < beta, 0.5 * d * d / beta, d - 0.5 * beta))


def complete_box_iou_loss_sum(boxes1, boxes2, eps=1e-7):
    x1, y1, x2, y2 = (boxes1[:, i] for i in range(4))
    x1g, y1g, x2g, y2g = (boxes2[:, i] for i in range(4))
    xkis1 = jnp.maximum(x1, x1g); ykis1 = jnp.maximum(y1, y1g)
    xkis2 = jnp.minimum(x2, x2g); ykis2 = jnp.minimum(y2, y2g)
    mask = (ykis2 > ykis1) & (xkis2 > xkis1)
    intsct = jnp.where(mask, (xkis2 - xkis1) * (ykis2 - ykis1), 0.0)
    union = (x2 - x1) * (y2 - y1) + (x2g - x1g) * (y2g - y1g) - intsct
    iou = intsct / (union + eps)
    xc1 = jnp.minimum(x1, x1g); yc1 = jnp.minimum(y1, y1g)
    xc2 = jnp.maximum(x2, x2g); yc2 = jnp.maximum(y2, y2g)
    diag = (xc2 - xc1) ** 2 + (yc2 - yc1) ** 2 + eps
    cdist = ((x2 + x1) / 2 - (x2g + x1g) / 2) ** 2 + ((y2 + y1) / 2 - (y2g + y1g) / 2) ** 2
    diou = 1.0 - iou + cdist / diag
    w_p, h_p = x2 - x1, y2 - y1
    w_g, h_g = x2g - x1g, y2g - y1g
    v = (4.0 / (jnp.pi ** 2)) * (jnp.arctan(w_g / h_g) - jnp.arctan(w_p / h_p)) ** 2
    alpha = v / (1.0 - iou + v + eps)
    return jnp.sum(diou + alpha * v)


def pothole_forward(params, images_nchw, gt_bboxes=None):
    """Matches PotholeModel.forward: NCHW images -> (B,4) preds [, loss]."""
    x = jnp.transpose(images_nchw.astype(jnp.bfloat16), (0, 2, 3, 1))  # NCHW -> NHWC (bf16)
    x = stem_forward(x, params["stem"])
    for blocks in params["stages"]:
        for p in blocks:
            x = block_forward(x, p)
    preds = gap_fc(x, params["fc"])                                    # (B, 4) f32
    if gt_bboxes is not None:
        loss1 = complete_box_iou_loss_sum(preds, gt_bboxes)
        loss2 = smooth_l1_loss_mean(preds, gt_bboxes)
        return preds, loss2 + loss1
    return preds


# ---------------------------------------------------------------------------

if __name__ == "__main__":
    key = jax.random.PRNGKey(0)
    k_img, k_box = jax.random.split(key)

    images = jax.random.normal(k_img, (2, 3, 64, 64), jnp.float32)   # NCHW, small
    params = init_model(seed=0)

    # default path (inference)
    preds = pothole_forward(params, images)
    # training-style path with ground-truth boxes (x1, y1, x2, y2)
    tl = jax.random.uniform(k_box, (2, 2), minval=0.0, maxval=32.0)
    gt_bboxes = jnp.concatenate([tl, tl + 16.0], axis=1)
    preds2, loss = pothole_forward(params, images, gt_bboxes)

    jax.block_until_ready((preds, preds2, loss))
    assert preds.shape == (2, 4) and preds2.shape == (2, 4)
    print("KERNEL_OK")
</pallas_src>

<mosaic_0001>
module attributes {stable_mosaic.version = 11 : i64} {
  func.func @_matmul_bias_act_kernel(%arg0: i32, %arg1: i32, %arg2: memref<128x128xbf16, #tpu.memory_space<vmem>>, %arg3: memref<128x128xbf16, #tpu.memory_space<vmem>>, %arg4: memref<1x128xf32, #tpu.memory_space<vmem>>, %arg5: memref<128x128xbf16, #tpu.memory_space<vmem>>) attributes {dimension_semantics = [#tpu.dimension_semantics<parallel>, #tpu.dimension_semantics<parallel>], iteration_bounds = array<i64: 16, 1>, scalar_prefetch = 0 : i64, scratch_operands = 0 : i64, tpu.core_type = #tpu.core_type<tc>, window_params = [{transform_indices = @transform_0, window_bounds = array<i64: 128, 128>}, {transform_indices = @transform_1, window_bounds = array<i64: 128, 128>}, {transform_indices = @transform_2, window_bounds = array<i64: 1, 128>}, {transform_indices = @transform_3, window_bounds = array<i64: 128, 128>}]} {
    %c0 = arith.constant 0 : index
    %c0_0 = arith.constant 0 : index
    %0 = vector.load %arg2[%c0, %c0_0] : memref<128x128xbf16, #tpu.memory_space<vmem>>, vector<128x128xbf16>
    %c0_1 = arith.constant 0 : index
    %c0_2 = arith.constant 0 : index
    %1 = vector.load %arg3[%c0_1, %c0_2] : memref<128x128xbf16, #tpu.memory_space<vmem>>, vector<128x128xbf16>
    %cst = arith.constant dense<0.000000e+00> : vector<128x128xf32>
    %2 = tpu.matmul %0, %1, %cst {dimension_numbers = #tpu.dot_dimension_numbers<[1], [0], [0], [1], [0, 0, 1, 1], [], []>} : vector<128x128xbf16>, vector<128x128xbf16>, vector<128x128xf32> -> vector<128x128xf32>
    %c0_3 = arith.constant 0 : index
    %c0_4 = arith.constant 0 : index
    %3 = vector.load %arg4[%c0_3, %c0_4] : memref<1x128xf32, #tpu.memory_space<vmem>>, vector<1x128xf32>
    %4 = vector.broadcast %3 : vector<1x128xf32> to vector<128x128xf32>
    %5 = arith.addf %2, %4 : vector<128x128xf32>
    %cst_5 = arith.constant 0.000000e+00 : f32
    %6 = vector.broadcast %cst_5 : f32 to vector<128x128xf32>
    %7 = arith.maximumf %5, %6 : vector<128x128xf32>
    %8 = arith.truncf %7 : vector<128x128xf32> to vector<128x128xbf16>
    %c0_6 = arith.constant 0 : index
    %c0_7 = arith.constant 0 : index
    %9 = vector.load %arg5[%c0_6, %c0_7] : memref<128x128xbf16, #tpu.memory_space<vmem>>, vector<128x128xbf16>
    tpu.vector_store %arg5[%c0_6, %c0_7], %8 {strides = array<i32>} : memref<128x128xbf16, #tpu.memory_space<vmem>>, vector<128x128xbf16>,
    return
  }
  func.func @transform_0(%arg0: i32, %arg1: i32) -> (i32, i32) {
    %c0_i32 = arith.constant 0 : i32
    %c0_i32_0 = arith.constant 0 : i32
    return %arg0, %c0_i32 : i32, i32
  }
  func.func @transform_1(%arg0: i32, %arg1: i32) -> (i32, i32) {
    %c0_i32 = arith.constant 0 : i32
    %c0_i32_0 = arith.constant 0 : i32
    return %c0_i32, %arg1 : i32, i32
  }
  func.func @transform_2(%arg0: i32, %arg1: i32) -> (i32, i32) {
    %c0_i32 = arith.constant 0 : i32
    %c0_i32_0 = arith.constant 0 : i32
    return %c0_i32, %arg1 : i32, i32
  }
  func.func @transform_3(%arg0: i32, %arg1: i32) -> (i32, i32) {
    %c0_i32 = arith.constant 0 : i32
    return %arg0, %arg1 : i32, i32
  }
}

</mosaic_0001>

<bundles_post_ra>
// kernel: tpu_custom_call.1
= control target key start
LH: loop header
LB: loop body
LE: loop exit
PB: predicated region body
PF: predicated region fallthrough
CT: control target
= control target key end

     0   :  { %8 = vsyncpa [#allocation3], 0  ;;  %s1345_s0 = inlined_call_operand.hbm [shape: bf16[2048,128], index: 0, kind: input, shape index: {}]   ;;  %s1346_s1 = inlined_call_operand.hbm [shape: bf16[128,128], index: 1, kind: input, shape index: {}]   ;;  %s1347_s2 = inlined_call_operand.vmem [shape: f32[1,128], index: 2, kind: input, shape index: {}]   ;;  %s1348_s3 = inlined_call_operand.hbm [shape: bf16[2048,128], index: 3, kind: output, shape index: {}]  }
   0x1   :  { %10 = vsyncpa [#allocation3 + $0x1], 0 }
   0x2   :  { %11 = vsyncpa [#allocation6], 0 }
   0x3   :  { %12 = vsyncpa [#allocation4], 0 }
   0x4   :  { %14 = vsyncpa [#allocation4 + $0x1], 0  ;;  %s1132_s12 = smov 0   ;;  %s1134_s13 = smov 0  }
   0x5   :  { %s1136_s14 = smov 0   ;;  %s1138_s15 = smov 0  }
   0x6   :  { %s1140_s16 = smov 0   ;;  %s1142_s17 = smov 0  }
   0x7 LB: > { %s692_s18 = sadd.s32 4294967295, %s1103_s17   ;;  %s693_s19 = sadd.s32 4294967294, %s1103_s17   ;;  %s1103_s17 = sphi %s1142_s17, %s20_s17   ;;  %s1099_s16 = sphi %s1140_s16, %s1369_s16   ;;  %s1095_s15 = sphi %s1138_s15, %s1368_s15   ;;  %s1091_s14 = sphi %s1136_s14, %s1367_s14   ;;  %s1087_s13 = sphi %s1134_s13, %s1366_s13   ;;  %s1083_s12 = sphi %s1132_s12, %s1365_s12  }
   0x8   : > { %p52_p0 = scmp.ne.s32.totalorder %s1087_s13, %s1083_s12  ;;  %p1166_p1 = scmp.eq.s32.totalorder %s692_s18, 0 }
   0x9   : > { %p1170_p2 = scmp.eq.s32.totalorder %s692_s18, 15  ;;  %p136_p3 = scmp.eq.s32.totalorder %s693_s19, 15 }
   0xa   : > { %p1176_p4 = por %p1166_p1, %p52_p0  ;;  %p694_p5 = scmp.ge.s32.totalorder %s1103_s17, 1 }
   0xb   : > { %p1181_p6 = por %p136_p3, %p52_p0  ;;  %p143_p7 = scmp.lt.s32.totalorder %s1103_s17, 17 }
   0xc   : > { %s1105_s25 = smov [#allocation5]   ;;  %s32_s28 = sadd.s32 1, %s1099_s16 }
   0xd   : > { %s1355_s23 = scalar_select %p1181_p6, 1, 0 }
   0xe   : > { %p1186_p8 = pnand %p694_p5, %p143_p7  ;;  %s157_s26 = sshll.u32 %s1105_s25, 4  ;;  %s158_s26 = int_to_ptr.vmem [resolvable:$true] %s157_s26 }
   0xf   : > { %s976_s29 = scalar_lea.vmem %s158_s26, 1024  ;;  %p984_p3 = scmp.lt.s32.totalorder %s158_s26, %s158_s26 }
  0x10   : > { %p880_p9 = pneg %p1186_p8  ;;  %p977_p12 = scmp.ne.s32.totalorder %s158_s26, %s976_s29 }
  0x11   : > { %p985_p5 = scmp.lt.s32.totalorder %s976_s29, %s976_s29 }
  0x12   : > { %p1194_p10 = pnand %p880_p9, %p1166_p1 }
  0x13   : > { %p986_p7 = por %p985_p5, %p984_p3 }
  0x14   : > { %p967_p11 = pneg %p1194_p10 }
  0x16   : > { %p979_p13 = pnand %p977_p12, %p967_p11 }
  0x18   : > { %p980_p0 = pneg %p979_p13 }
  0x1a   : > { %p987_p6 = pnand %p986_p7, %p980_p0 }
  0x1c   : > { %990 = shalt.err (!%p987_p6)
}
  0x1d   : > { %s1349_s30 = smov 64   ;;  %s1350_s4 = smov 4  }
  0x1e   : > { %883 = dma.hbm_to_vmem [thread:$0]  (!%p1194_p10), %s1346_s1, 1024, %s158_s26, [#allocation6], %s1349_s30, %s1349_s30, %s1350_s4  }
  0x1f   : > { %p34_p6 = scmp.ge.s32.totalorder %s32_s28, 16  ;;  %s39_s7 = sadd.s32 1, %s1091_s14 }
  0x20   : > { %p46_p9 = scmp.ne.s32.totalorder %s1091_s14, %s1087_s13  ;;  %p47_p11 = scmp.eq.s32.totalorder %s1103_s17, 0 }
  0x21   : > { %s1371_s28 = smov (%p34_p6, %s32_s28), 0  ;;  %p893_p0 = scmp.lt.s32.totalorder %s1103_s17, 16 }
  0x22   : > { %p1215_p12 = por %p47_p11, %p46_p9  ;;  %p1221_p13 = por %p1170_p2, %p46_p9 }
  0x23   : > { %s36_s10 = ssub.s32 %s1099_s16, %s1371_s28  ;;  %s177_s11 = sand.u32 1, %s1091_s14  }
  0x24   : > { %s1359_s9 = scalar_select %p1221_p13, 1, 0 }
  0x25   : > { %p37_p10 = scmp.eq.s32.totalorder %s36_s10, 0  ;;  %s698_s18 = sshll.u32 %s177_s11, 6 }
  0x26   : > { %s743_s25 = sshll.u32 %s1099_s16, 10  ;;  %s181_s5 = scalar_lea.vmem [#allocation2], %s698_s18 }
  0x27   : > { %s1230_s19 = scalar_select %p37_p10, %s1091_s14, %s39_s7  }
  0x28   : > { %s187_s29 = scalar_lea.hbm %s1345_s0, %s743_s25  ;;  %s188_s6 = sshll.u32 %s181_s5, 4  ;;  %s189_s6 = int_to_ptr.vmem [resolvable:$true] %s188_s6 }
  0x29   : > { %p1238_p2 = pnand %p893_p0, %p1215_p12  ;;  %s178_s30 = scalar_lea.sflag [#allocation3], %s177_s11 }
  0x2a   : > { %s1004_s10 = scalar_lea.vmem %s189_s6, 1024  ;;  %s1108_s7 = smov [#allocation2]  }
  0x2b   : > { %p993_p3 = pneg %p1238_p2  ;;  %p1005_p5 = scmp.ne.s32.totalorder %s189_s6, %s1004_s10 }
  0x2c   : > { %s1009_s4 = sshll.u32 %s1108_s7, 4  ;;  %s1010_s4 = int_to_ptr.vmem [resolvable:$false] %s1009_s4 }
  0x2d   : > { %p1007_p7 = pnand %p1005_p5, %p993_p3  ;;  %s1011_s25 = scalar_lea.vmem %s1010_s4, 2048 }
  0x2e   : > { %p1012_p9 = scmp.lt.s32.totalorder %s189_s6, %s1010_s4  ;;  %p1013_p11 = scmp.lt.s32.totalorder %s1011_s25, %s1004_s10 }
  0x2f   : > { %p1008_p6 = pneg %p1007_p7 }
  0x30   : > { %p1014_p10 = por %p1013_p11, %p1012_p9 }
  0x32   : > { %p1015_p13 = pnand %p1014_p10, %p1008_p6 }
  0x34   : > { %1018 = shalt.err (!%p1015_p13)
}
  0x35   : > { %s1361_s8 = smov 4   ;;  %s1362_s18 = smov 64  }
  0x36   : > { %887 = dma.hbm_to_vmem [thread:$0]  (!%p1238_p2), %s187_s29, 1024, %s189_s6, %s178_s30, %s1362_s18, %s1362_s18, %s1361_s8  }
  0x37   : > { %200 = sbr.rel (%p1186_p8) target bundleno = 323 (0x143), region = 32  ;;  %s1252_s11 = sand.u32 (!%p1186_p8), 1, %s1087_s13  }
  0x38   : > { %s702_s4 = sshll.u32 (!%p1186_p8), %s1252_s11, 6  ;;  %s203_s26 = scalar_lea.sflag (!%p1186_p8), [#allocation3], %s1252_s11 }
  0x39   : > { %s1258_s27 = scalar_lea.vmem (!%p1186_p8), [#allocation2], %s702_s4 }
  0x3c   : > { %1070 = dma.done.wait (%p1176_p4), %s203_s26, 1024  }
  0x3d   : > { %1072 = vsyncadd (%p1176_p4), %s203_s26, 4294966272 }
  0x3e   : > { %1074 = dma.done.wait (%p1166_p1), [#allocation6], 1024  }
  0x3f   : > { %1076 = vsyncadd (%p1166_p1), [#allocation6], 4294966272  ;;  %v949_v0 = vld [vmem:[#allocation5 + $0x38] sm:$0xff]   ;;  %v950_v1 = vld [vmem:[#allocation5 + $0x30] sm:$0xff]   ;;  %s1281_s24 = scalar_lea.vmem [#allocation7], %s702_s4  ;;  %s760_s29 = sshll.u32 %s1095_s15, 10 }
  0x40   : > { %824 = vmatprep.subr.bf16.mxu0 %v949_v0  ;;  %856 = vmatprep.subr.bf16.mxu1 %v949_v0  ;;  %v951_v2 = vld [vmem:[#allocation5 + $0x28] sm:$0xff]   ;;  %v952_v3 = vld [vmem:[#allocation5 + $0x20] sm:$0xff]   ;;  %v953_v6 = vld [vmem:[#allocation5 + $0x18] sm:$0xff]   ;;  %s585_s30 = sshll.u32 %s1281_s24, 4  ;;  %s1294_s21 = scalar_lea.hbm %s1348_s3, %s760_s29  ;;  %s1289_s30 = int_to_ptr.vmem [resolvable:$true] %s585_s30 }
  0x41   : > { %825 = vmatpush3.bf16.msra.mxu0 %v949_v0  ;;  %864 = vmatpush3.bf16.msra.mxu1 %v949_v0  ;;  %v957_v4 = vld [vmem:[%s1258_s27] sm:$0xff]   ;;  %v954_v7 = vld [vmem:[#allocation5 + $0x10] sm:$0xff]   ;;  %v955_v8 = vld [vmem:[#allocation5 + $0x8] sm:$0xff]   ;;  %s571_s15 = scalar_lea.sflag [#allocation4], %s1252_s11  ;;  %s1019_s10 = scalar_lea.vmem %s1289_s30, 1024 }
  0x42   : > { %826 = vmatprep.subr.bf16.mxu0 %v950_v1  ;;  %857 = vmatprep.subr.bf16.mxu1 %v950_v1  ;;  %v958_v5 = vld [vmem:[%s1258_s27 + $0x20] sm:$0xff]   ;;  %v959_v10 = vld [vmem:[%s1258_s27 + $0x8] sm:$0xff]   ;;  %v961_v12 = vld [vmem:[%s1258_s27 + $0x10] sm:$0xff]   ;;  %p1020_p1 = scmp.ne.s32.totalorder %s1289_s30, %s1019_s10  ;;  %p1363_p4 = scmp.ne.s32.totalorder %s1359_s9, 0 }
  0x43   : > { %840 = vmatprep.mubr.bf16.mxu0 %v957_v4  ;;  %848 = vmatprep.mubr.bf16.mxu1 %v958_v5  ;;  %v956_v9 = vld [vmem:[#allocation5] sm:$0xff]   ;;  %v960_v11 = vld [vmem:[%s1258_s27 + $0x28] sm:$0xff]   ;;  %v962_v13 = vld [vmem:[%s1258_s27 + $0x30] sm:$0xff]   ;;  %s1109_s7 = smov [#allocation7]  }
  0x44   : > { %v963_v14 = vld [vmem:[%s1258_s27 + $0x18] sm:$0xff]   ;;  %v705_v16 = vld [vmem:[%s1347_s2] ss:$0 sm:$0xff]  ;;  %p1021_p8 = pnand %p1020_p1, %p1363_p4  ;;  %s1023_s25 = sshll.u32 %s1109_s7, 4  ;;  %s1024_s25 = int_to_ptr.vmem [resolvable:$false] %s1023_s25 }
  0x45   : > { %827 = vmatpush3.bf16.msra.mxu0 %v950_v1  ;;  %865 = vmatpush3.bf16.msra.mxu1 %v950_v1  ;;  %v964_v15 = vld [vmem:[%s1258_s27 + $0x38] sm:$0xff]   ;;  %s1025_s8 = scalar_lea.vmem %s1024_s25, 2048  ;;  %p1026_p13 = scmp.lt.s32.totalorder %s1289_s30, %s1024_s25 }
  0x46   : > { %828 = vmatprep.subr.bf16.mxu0 %v951_v2  ;;  %858 = vmatprep.subr.bf16.mxu1 %v951_v2  ;;  %p1022_p12 = pneg %p1021_p8  ;;  %p1027_p0 = scmp.lt.s32.totalorder %s1025_s8, %s1019_s10 }
  0x48   : > { %p1028_p2 = por %p1027_p0, %p1026_p13 }
  0x49   : > { %829 = vmatpush3.bf16.msra.mxu0 %v951_v2  ;;  %866 = vmatpush3.bf16.msra.mxu1 %v951_v2 }
  0x4a   : > { %830 = vmatprep.subr.bf16.mxu0 %v952_v3  ;;  %859 = vmatprep.subr.bf16.mxu1 %v952_v3  ;;  %p1029_p3 = pnand %p1028_p2, %p1022_p12 }
  0x4d   : > { %831 = vmatpush3.bf16.msra.mxu0 %v952_v3  ;;  %867 = vmatpush3.bf16.msra.mxu1 %v952_v3 }
  0x4e   : > { %832 = vmatprep.subr.bf16.mxu0 %v953_v6  ;;  %860 = vmatprep.subr.bf16.mxu1 %v953_v6 }
  0x51   : > { %833 = vmatpush3.bf16.msra.mxu0 %v953_v6  ;;  %868 = vmatpush3.bf16.msra.mxu1 %v953_v6 }
  0x52   : > { %834 = vmatprep.subr.bf16.mxu0 %v954_v7  ;;  %861 = vmatprep.subr.bf16.mxu1 %v954_v7 }
  0x55   : > { %835 = vmatpush3.bf16.msra.mxu0 %v954_v7  ;;  %869 = vmatpush3.bf16.msra.mxu1 %v954_v7 }
  0x56   : > { %836 = vmatprep.subr.bf16.mxu0 %v955_v8  ;;  %862 = vmatprep.subr.bf16.mxu1 %v955_v8 }
  0x59   : > { %837 = vmatpush3.bf16.msra.mxu0 %v955_v8  ;;  %870 = vmatpush3.bf16.msra.mxu1 %v955_v8 }
  0x5a   : > { %838 = vmatprep.subr.bf16.mxu0 %v956_v9  ;;  %863 = vmatprep.subr.bf16.mxu1 %v956_v9 }
  0x5d   : > { %839 = vmatpush3.bf16.msra.mxu0 %v956_v9  ;;  %871 = vmatpush3.bf16.msra.mxu1 %v956_v9 }
  0x60   : > { %841 = vmatmul.mubr.bf16.vlgmr.msra.gmra.mxu0 %v959_v10  ;;  %849 = vmatmul.mubr.bf16.vlgmr.msra.gmra.mxu1 %v960_v11 }
  0x61   : > { %844 = vmatprep.mubr.bf16.mxu0 %v961_v12  ;;  %852 = vmatprep.mubr.bf16.mxu1 %v962_v13 }
  0x68   : > { %845 = vmatmul.mubr.bf16.gmra.mxu0 %v963_v14  ;;  %853 = vmatmul.mubr.bf16.gmra.mxu1 %v964_v15 }
 0x120   : > { %v842_v17 = vpop.f32.mrf.mxu0  ;;  %v850_v18 = vpop.f32.mrf.mxu1 }
 0x121   : > { %v420_v19 = vadd.f32 %v842_v17, %v705_v16  ;;  %v452_v20 = vadd.f32 %v850_v18, %v705_v16 }
 0x122   : > { %v411_v21 = vpop.f32.mrf.mxu0  ;;  %v443_v22 = vpop.f32.mrf.mxu1 }
 0x123   : > { %v412_v23 = vadd.f32 %v705_v16, %v411_v21  ;;  %v444_v24 = vadd.f32 %v705_v16, %v443_v22  ;;  %v476_v29 = vmax.f32 %v420_v19, 0.0  ;;  %v484_v30 = vmax.f32 %v452_v20, 0.0 }
 0x124   : > { %v843_v25 = vpop.f32.mrf.mxu0  ;;  %v851_v26 = vpop.f32.mrf.mxu1 }
 0x125   : > { %v423_v27 = vadd.f32 %v843_v25, %v705_v16  ;;  %v455_v28 = vadd.f32 %v851_v26, %v705_v16  ;;  %v474_v37 = vmax.f32 %v412_v23, 0.0  ;;  %v482_v38 = vmax.f32 %v444_v24, 0.0 }
 0x126   : > { %v414_v31 = vpop.f32.mrf.mxu0  ;;  %v446_v32 = vpop.f32.mrf.mxu1 }
 0x127   : > { %v477_v33 = vmax.f32 %v423_v27, 0.0  ;;  %v485_v34 = vmax.f32 %v455_v28, 0.0  ;;  %v415_v35 = vadd.f32 %v705_v16, %v414_v31  ;;  %v447_v36 = vadd.f32 %v705_v16, %v446_v32 }
 0x128   : > { %v846_v39 = vpop.f32.mrf.mxu0  ;;  %v854_v40 = vpop.f32.mrf.mxu1 }
 0x129   : > { %v769_v41 = vpack.c.bf16 %v477_v33, %v476_v29  ;;  %v789_v42 = vpack.c.bf16 %v485_v34, %v484_v30  ;;  %v475_v43 = vmax.f32 %v415_v35, 0.0  ;;  %v483_v44 = vmax.f32 %v447_v36, 0.0 }
 0x12a   : > { %v436_v45 = vadd.f32 %v846_v39, %v705_v16  ;;  %v468_v46 = vadd.f32 %v854_v40, %v705_v16  ;;  %v427_v47 = vpop.f32.mrf.mxu0  ;;  %v459_v48 = vpop.f32.mrf.mxu1 }
 0x12b   : > { %801 = vst [vmem:[%s1281_s24 + $0x8] sm:$0xff] %v769_v41   ;;  %805 = vst [vmem:[%s1281_s24 + $0x28] sm:$0xff] %v789_v42   ;;  %v764_v49 = vpack.c.bf16 %v475_v43, %v474_v37  ;;  %v784_v50 = vpack.c.bf16 %v483_v44, %v482_v38  ;;  %v428_v51 = vadd.f32 %v705_v16, %v427_v47 }
 0x12c   : > { %v460_v52 = vadd.f32 %v705_v16, %v459_v48  ;;  %v847_v53 = vpop.f32.mrf.mxu0  ;;  %v855_v54 = vpop.f32.mrf.mxu1  ;;  %v480_v57 = vmax.f32 %v436_v45, 0.0  ;;  %v488_v58 = vmax.f32 %v468_v46, 0.0 }
 0x12d   : > { %765 = vst [vmem:[%s1281_s24] sm:$0xff] %v764_v49   ;;  %804 = vst [vmem:[%s1281_s24 + $0x20] sm:$0xff] %v784_v50   ;;  %v439_v55 = vadd.f32 %v847_v53, %v705_v16  ;;  %v471_v56 = vadd.f32 %v855_v54, %v705_v16  ;;  %v478_v1 = vmax.f32 %v428_v51, 0.0 }
 0x12e   : > { %v430_v59 = vpop.f32.mrf.mxu0  ;;  %v462_v60 = vpop.f32.mrf.mxu1  ;;  %v486_v2 = vmax.f32 %v460_v52, 0.0 }
 0x12f   : > { %v481_v61 = vmax.f32 %v439_v55, 0.0  ;;  %v489_v62 = vmax.f32 %v471_v56, 0.0  ;;  %v431_v63 = vadd.f32 %v705_v16, %v430_v59  ;;  %v463_v0 = vadd.f32 %v705_v16, %v462_v60 }
 0x131   : > { %v779_v3 = vpack.c.bf16 %v481_v61, %v480_v57  ;;  %v799_v4 = vpack.c.bf16 %v489_v62, %v488_v58  ;;  %v479_v5 = vmax.f32 %v431_v63, 0.0  ;;  %v487_v6 = vmax.f32 %v463_v0, 0.0 }
 0x133   : > { %803 = vst [vmem:[%s1281_s24 + $0x18] sm:$0xff] %v779_v3   ;;  %807 = vst [vmem:[%s1281_s24 + $0x38] sm:$0xff] %v799_v4   ;;  %v774_v7 = vpack.c.bf16 %v479_v5, %v478_v1  ;;  %v794_v8 = vpack.c.bf16 %v487_v6, %v486_v2 }
 0x135   : > { %802 = vst [vmem:[%s1281_s24 + $0x10] sm:$0xff] %v774_v7   ;;  %806 = vst [vmem:[%s1281_s24 + $0x30] sm:$0xff] %v794_v8  }
 0x136   : > { %1032 = shalt.err (!%p1029_p3)
}
 0x137   : > { %s1033_s18 = scalar_lea.hbm %s1294_s21, 1024  ;;  %s1037_s27 = scalar_lea.hbm %s1348_s3, 16384 }
 0x138   : > { %p1034_p5 = scmp.ne.s32.totalorder %s1294_s21, %s1033_s18  ;;  %p1038_p9 = scmp.lt.s32.totalorder %s1294_s21, %s1348_s3 }
 0x139   : > { %p1039_p11 = scmp.lt.s32.totalorder %s1037_s27, %s1033_s18 }
 0x13a   : > { %p1035_p7 = pnand %p1034_p5, %p1363_p4 }
 0x13b   : > { %p1040_p10 = por %p1039_p11, %p1038_p9 }
 0x13c   : > { %p1036_p6 = pneg %p1035_p7 }
 0x13e   : > { %p1041_p1 = pnand %p1040_p10, %p1036_p6 }
 0x140   : > { %1044 = shalt.err (!%p1041_p1)
}
 0x141   : > { %s1110_s24 = smov 64   ;;  %s1111_s29 = smov 4  }
 0x142   : > { %878 = dma.vmem_to_hbm [thread:$0]  (%p1363_p4), %s1289_s30, 1024, %s1294_s21, %s571_s15, %s1110_s24, %s1110_s24, %s1111_s29  }
 0x143 PF: > { %p895_p8 = scmp.ge.s32.totalorder %s1103_s17, 2  ;;  %s600_s5 = sand.u32 1, %s1083_s12  }
 0x144   : > { %p1364_p12 = scmp.ne.s32.totalorder %s1355_s23, 0  ;;  %s601_s6 = scalar_lea.sflag [#allocation4], %s600_s5 }
 0x146   : > { %p889_p13 = pnand %p895_p8, %p1364_p12 }
 0x148   : > { %p890_p0 = pneg %p889_p13 }
 0x14a   : > { %1078 = dma.done.wait (%p890_p0), %s601_s6, 1024  }
 0x14b   : > { %1080 = vsyncadd (%p890_p0), %s601_s6, 4294966272  ;;  %s20_s17 = sadd.s32 1, %s1103_s17   ;;  %s1365_s12 = smov %s1087_s13 }
 0x14c   : > { %p17_p2 = scmp.ge.s32.totalorder %s20_s17, 18   ;;  %s1366_s13 = smov %s1091_s14 }
 0x14d   : > { %s1367_s14 = smov %s1230_s19  ;;  %s1368_s15 = smov %s1099_s16 }
 0x14e   : > { %s1369_s16 = smov %s1371_s28  ;;  %19 = sbr.rel (!%p17_p2) target bundleno = 7 (0x7), region = 85 }
 0x153   :  { %606 = vsyncpa [#allocation3], 1 }
 0x154   :  { %608 = vsyncpa [#allocation3 + $0x1], 1 }
 0x155   :  { %609 = vsyncpa [#allocation6], 1 }
 0x156   :  { %610 = vsyncpa [#allocation4], 1 }
 0x157   :  { %612 = vsyncpa [#allocation4 + $0x1], 1 }

</bundles_post_ra>
